<compile_context>
chip_gen: v7x
topology: tpu7x:2x2x1
jax: 0.10.0
libtpu: 0.0.40
codegen_flags: <defaults>
</compile_context>

<pallas_src>
import jax
import jax.numpy as jnp
from jax import lax
from jax.experimental import pallas as pl
from jax.experimental.pallas import tpu as pltpu

LANE = 128
SUBLANE = 8
CHUNK_ROWS = 1024            # in-kernel accumulation chunk (512 KiB f32 temps)
SMALL_ROWS = 4096            # <= this many 128-lane rows -> single-tile fast path
_MIB = 1024 * 1024


def _cdiv(a, b):
    return -(-a // b)


def _round_up(a, b):
    return _cdiv(a, b) * b


def _tpu_info():
    get = getattr(pltpu, "get_tpu_info", None)
    if get is None:
        return None
    try:
        return get()
    except Exception:
        return None


def _vmem_capacity_bytes():
    info = _tpu_info()
    cap = getattr(info, "vmem_capacity_bytes", None) if info is not None else None
    if isinstance(cap, int) and cap > 0:
        return cap
    return 64 * _MIB          # conservative default (v7x-sized)


def _num_tensorcores():
    info = _tpu_info()
    if info is not None:
        for name in ("num_cores", "core_count", "num_tensorcores", "tensorcore_count"):
            v = getattr(info, name, None)
            if isinstance(v, int) and v >= 1:
                return min(int(v), 2)
    return 1


def _make_kernel(tile_rows, chunk_rows, rows_valid, steps_per_core, needs_mask):
    """Kernel closure over static tiling parameters."""
    n_chunks = tile_rows // chunk_rows

    def kernel(x_ref, y_ref, o_ref):
        # x_ref, y_ref: (tile_rows, 128) tiles in native dtype
        # o_ref:        (1, 8, 128) f32 partial-sum block, resident across axis 1
        core = pl.program_id(0)
        step = pl.program_id(1)

        @pl.when(step == 0)
        def _():
            o_ref[...] = jnp.zeros_like(o_ref)

        # Rows of this tile that hold real data. <= 0 for redundant (clamped)
        # trailing steps of a core split; > tile_rows for interior tiles.
        global_step = core * steps_per_core + step
        valid_rows = rows_valid - global_step * tile_rows

        def body(k, acc):
            r0 = pl.multiple_of(k * chunk_rows, chunk_rows)
            xs = x_ref[pl.ds(r0, chunk_rows), :].astype(jnp.float32)
            ys = y_ref[pl.ds(r0, chunk_rows), :].astype(jnp.float32)
            d = xs - ys
            sq = d * d
            if needs_mask:
                # Mask rows past the end of the real data (garbage in the
                # partially out-of-bounds last block). Compute has huge slack
                # vs. the DMA, so this is free.
                rid = r0 + lax.broadcasted_iota(jnp.int32, (chunk_rows, LANE), 0)
                sq = jnp.where(rid < valid_rows, sq, 0.0)
            # Fold sublane groups with plain VPU adds; stays on (8, 128) vreg
            # boundaries so there is no layout shuffle.
            return acc + sq.reshape(-1, SUBLANE, LANE).sum(axis=0)

        part = lax.fori_loop(0, n_chunks, body,
                             jnp.zeros((SUBLANE, LANE), jnp.float32), unroll=True)
        o_ref[...] += part[None, :, :]

    return kernel


def mse_loss(inp, target, reduction="mean"):
    """Mirrors MSELoss.forward: ((inp - target)**2).mean() if 'mean' else .sum()."""
    assert inp.shape == target.shape, "input and target must have the same shape"
    n = inp.size
    assert n > 0, "empty input"

    dt = jnp.promote_types(inp.dtype, target.dtype)
    if not jnp.issubdtype(dt, jnp.floating):
        dt = jnp.float32
    x = inp.reshape(-1).astype(dt)
    y = target.reshape(-1).astype(dt)

    itemsize = jnp.dtype(dt).itemsize
    lane_rows = _cdiv(n, LANE)

    # ---- generation-aware tile / VMEM sizing -------------------------------
    vmem_cap = _vmem_capacity_bytes()
    if vmem_cap >= 96 * _MIB:          # v5e / v6e: 128 MiB physical VMEM
        tile_bytes, vmem_limit = 8 * _MIB, 64 * _MIB
    else:                              # v7x (64 MiB physical) or unknown
        tile_bytes, vmem_limit = 4 * _MIB, 40 * _MIB

    small = lane_rows <= SMALL_ROWS
    if small:
        # Single-tile fast path: one grid step, no core split, no mask.
        rows = _round_up(lane_rows, 16)              # 16: bf16-packing safe
        tile_rows = rows
        chunk_rows = rows
        num_splits, steps_per_core, total_steps = 1, 1, 1
        needs_mask = False
        clamp = False
    else:
        rows = lane_rows                             # no row padding: tail is masked
        cap_rows = max(CHUNK_ROWS,
                       (tile_bytes // (LANE * itemsize)) // CHUNK_ROWS * CHUNK_ROWS)
        tile_rows = min(cap_rows, (rows // CHUNK_ROWS) * CHUNK_ROWS)
        chunk_rows = CHUNK_ROWS
        total_steps = _cdiv(rows, tile_rows)
        num_splits = min(_num_tensorcores(), total_steps)
        steps_per_core = _cdiv(total_steps, num_splits)
        clamp = (num_splits * steps_per_core) != total_steps
        needs_mask = (rows % tile_rows != 0) or clamp

    # ---- layout: flat -> lane-dense (rows, 128) slab ------------------------
    n_slab = rows * LANE
    if n_slab != n:
        # Zero padding of BOTH operands contributes (0-0)^2 = 0 to the sum.
        # Only hit when n isn't 128-aligned (<= 127 elems) or on the tiny
        # single-tile path; the bulk streaming path is copy-free.
        x = jnp.pad(x, (0, n_slab - n))
        y = jnp.pad(y, (0, n_slab - n))
    x = x.reshape(rows, LANE)
    y = y.reshape(rows, LANE)

    # ---- grid / specs --------------------------------------------------------
    last_step = total_steps - 1
    if clamp:
        # Redundant trailing steps of the last core re-read the final valid
        # block (kept in bounds) and are masked to zero inside the kernel.
        def in_map(c, i):
            return (jnp.minimum(c * steps_per_core + i, last_step), 0)
    else:
        def in_map(c, i):
            return (c * steps_per_core + i, 0)

    kernel = _make_kernel(tile_rows, chunk_rows, rows, steps_per_core, needs_mask)

    partials = pl.pallas_call(
        kernel,
        out_shape=jax.ShapeDtypeStruct((num_splits, SUBLANE, LANE), jnp.float32),
        grid_spec=pltpu.PrefetchScalarGridSpec(
            num_scalar_prefetch=0,
            grid=(num_splits, steps_per_core),
            in_specs=[
                pl.BlockSpec((tile_rows, LANE), in_map),
                pl.BlockSpec((tile_rows, LANE), in_map),
            ],
            out_specs=pl.BlockSpec((1, SUBLANE, LANE), lambda c, i: (c, 0, 0)),
        ),
        compiler_params=pltpu.CompilerParams(
            # "parallel" shards the core-split axis across TensorCores where the
            # chip has more than one; on 1-TC chips (v5e/v6e) the axis has size 1.
            # TODO(synk): switch the split axis to pltpu.CORE_PARALLEL on v7x once
            # verified on that generation.
            dimension_semantics=("parallel", "arbitrary"),
            vmem_limit_bytes=vmem_limit,
        ),
    )(x, y)

    total = jnp.sum(partials)            # tiny (num_splits, 8, 128) reduce via XLA
    if reduction == "mean":
        return total / n
    # The reference module treats every non-'mean' reduction (incl. 'none') as sum.
    return total


if __name__ == "__main__":
    key = jax.random.PRNGKey(0)
    k1, k2 = jax.random.split(key)

    # Small shapes consistent with a typical MSELoss call.
    shape = (2, 4, 16, 16)
    x = jax.random.normal(k1, shape, dtype=jnp.float32)
    t = jax.random.normal(k2, shape, dtype=jnp.float32)

    loss_mean = mse_loss(x, t, reduction="mean")
    loss_sum = mse_loss(x, t, reduction="sum")

    # bf16 streaming path (half the HBM bytes; f32 accumulation in-kernel).
    xb = x.astype(jnp.bfloat16)
    tb = t.astype(jnp.bfloat16)
    loss_bf16_mean = mse_loss(xb, tb, reduction="mean")

    # Non-multiple-of-128 size -> exercises the (tiny) pad fallback.
    xo = jax.random.normal(k1, (3, 5, 7), dtype=jnp.float32)
    to = jax.random.normal(k2, (3, 5, 7), dtype=jnp.float32)
    loss_odd = mse_loss(xo, to, reduction="mean")

    # Larger, non-tile-aligned input -> exercises the multi-step masked path
    # (ragged last tile handled in-kernel, no jnp.pad).
    xm = jax.random.normal(k1, (1037, 640), dtype=jnp.float32)
    tm = jax.random.normal(k2, (1037, 640), dtype=jnp.float32)
    loss_med = mse_loss(xm, tm, reduction="mean")

    jax.block_until_ready((loss_mean, loss_sum, loss_bf16_mean, loss_odd, loss_med))

    # Pure-JAX references.
    ref_sum = jnp.sum((x - t) ** 2)
    assert jnp.allclose(loss_sum, ref_sum, rtol=1e-5, atol=1e-5)
    assert jnp.allclose(loss_mean, ref_sum / x.size, rtol=1e-5, atol=1e-5)

    ref_bf = jnp.mean((xb.astype(jnp.float32) - tb.astype(jnp.float32)) ** 2)
    assert jnp.allclose(loss_bf16_mean, ref_bf, rtol=1e-4, atol=1e-4)

    ref_odd = jnp.mean((xo - to) ** 2)
    assert jnp.allclose(loss_odd, ref_odd, rtol=1e-5, atol=1e-5)

    ref_med = jnp.mean((xm - tm) ** 2)
    assert jnp.allclose(loss_med, ref_med, rtol=1e-4, atol=1e-6)

    print("KERNEL_OK")
</pallas_src>

<mosaic_0001>
module attributes {stable_mosaic.version = 11 : i64} {
  func.func @kernel(%arg0: i32, %arg1: i32, %arg2: memref<16x128xf32, #tpu.memory_space<vmem>>, %arg3: memref<16x128xf32, #tpu.memory_space<vmem>>, %arg4: memref<1x8x128xf32, #tpu.memory_space<vmem>>) attributes {dimension_semantics = [#tpu.dimension_semantics<parallel>, #tpu.dimension_semantics<arbitrary>], iteration_bounds = array<i64: 1, 1>, scalar_prefetch = 0 : i64, scratch_operands = 0 : i64, tpu.core_type = #tpu.core_type<tc>, window_params = [{transform_indices = @transform_0, window_bounds = array<i64: 16, 128>}, {transform_indices = @transform_1, window_bounds = array<i64: 16, 128>}, {transform_indices = @transform_2, window_bounds = array<i64: 1, 8, 128>}]} {
    %c0_i32 = arith.constant 0 : i32
    %0 = arith.cmpi eq, %arg1, %c0_i32 : i32
    %1 = arith.extui %0 : i1 to i32
    %c0_i32_0 = arith.constant 0 : i32
    %2 = arith.cmpi ne, %1, %c0_i32_0 : i32
    scf.if %2 {
      %cst_10 = arith.constant 0.000000e+00 : f32
      %19 = vector.broadcast %cst_10 : f32 to vector<1x8x128xf32>
      %c0_11 = arith.constant 0 : index
      %c0_12 = arith.constant 0 : index
      %c0_13 = arith.constant 0 : index
      %20 = vector.load %arg4[%c0_11, %c0_12, %c0_13] : memref<1x8x128xf32, #tpu.memory_space<vmem>>, vector<1x8x128xf32>
      tpu.vector_store %arg4[%c0_11, %c0_12, %c0_13], %19 {strides = array<i32>} : memref<1x8x128xf32, #tpu.memory_space<vmem>>, vector<1x8x128xf32>,
    } else {
    }
    %cst = arith.constant 0.000000e+00 : f32
    %3 = vector.broadcast %cst : f32 to vector<8x128xf32>
    %c0_i32_1 = arith.constant 0 : i32
    %c16_i32 = arith.constant 16 : i32
    %4 = arith.muli %c0_i32_1, %c16_i32 : i32
    %5 = tpu.assume_multiple %4, 16 : i32
    %6 = arith.index_cast %5 : i32 to index
    %c0 = arith.constant 0 : index
    %7 = vector.load %arg2[%6, %c0] : memref<16x128xf32, #tpu.memory_space<vmem>>, vector<16x128xf32>
    %8 = arith.index_cast %5 : i32 to index
    %c0_2 = arith.constant 0 : index
    %9 = vector.load %arg3[%8, %c0_2] : memref<16x128xf32, #tpu.memory_space<vmem>>, vector<16x128xf32>
    %10 = arith.subf %7, %9 : vector<16x128xf32>
    %11 = arith.mulf %10, %10 : vector<16x128xf32>
    %12 = vector.shape_cast %11 : vector<16x128xf32> to vector<2x8x128xf32>
    %cst_3 = arith.constant dense<0.000000e+00> : vector<8x128xf32>
    %13 = vector.multi_reduction <add>, %12, %cst_3 [0] : vector<2x8x128xf32> to vector<8x128xf32>
    %14 = arith.addf %3, %13 : vector<8x128xf32>
    %c1_i32 = arith.constant 1 : i32
    %c0_4 = arith.constant 0 : index
    %c0_5 = arith.constant 0 : index
    %c0_6 = arith.constant 0 : index
    %15 = vector.load %arg4[%c0_4, %c0_5, %c0_6] : memref<1x8x128xf32, #tpu.memory_space<vmem>>, vector<1x8x128xf32>
    %16 = vector.shape_cast %14 : vector<8x128xf32> to vector<1x8x128xf32>
    %17 = arith.addf %15, %16 : vector<1x8x128xf32>
    %c0_7 = arith.constant 0 : index
    %c0_8 = arith.constant 0 : index
    %c0_9 = arith.constant 0 : index
    %18 = vector.load %arg4[%c0_7, %c0_8, %c0_9] : memref<1x8x128xf32, #tpu.memory_space<vmem>>, vector<1x8x128xf32>
    tpu.vector_store %arg4[%c0_7, %c0_8, %c0_9], %17 {strides = array<i32>} : memref<1x8x128xf32, #tpu.memory_space<vmem>>, vector<1x8x128xf32>,
    return
  }
  func.func @transform_0(%arg0: i32, %arg1: i32) -> (i32, i32) {
    %c1_i32 = arith.constant 1 : i32
    %0 = arith.muli %arg0, %c1_i32 : i32
    %1 = arith.addi %0, %arg1 : i32
    %c0_i32 = arith.constant 0 : i32
    %c0_i32_0 = arith.constant 0 : i32
    return %1, %c0_i32 : i32, i32
  }
  func.func @transform_1(%arg0: i32, %arg1: i32) -> (i32, i32) {
    %c1_i32 = arith.constant 1 : i32
    %0 = arith.muli %arg0, %c1_i32 : i32
    %1 = arith.addi %0, %arg1 : i32
    %c0_i32 = arith.constant 0 : i32
    %c0_i32_0 = arith.constant 0 : i32
    return %1, %c0_i32 : i32, i32
  }
  func.func @transform_2(%arg0: i32, %arg1: i32) -> (i32, i32, i32) {
    %c0_i32 = arith.constant 0 : i32
    %c0_i32_0 = arith.constant 0 : i32
    %c0_i32_1 = arith.constant 0 : i32
    return %arg0, %c0_i32, %c0_i32_0 : i32, i32, i32
  }
}

</mosaic_0001>

<bundles_post_ra>
// kernel: tpu_custom_call.1
= control target key start
LH: loop header
LB: loop body
LE: loop exit
PB: predicated region body
PF: predicated region fallthrough
CT: control target
= control target key end

     0   :  { %7 = vsyncpa [#allocation3], 0  ;;  %s220_s0 = inlined_call_operand.hbm [shape: f32[16,128], index: 0, kind: input, shape index: {}]   ;;  %s221_s1 = inlined_call_operand.hbm [shape: f32[16,128], index: 1, kind: input, shape index: {}]   ;;  %s222_s2 = inlined_call_operand.hbm [shape: f32[1,8,128], index: 2, kind: output, shape index: {}]  }
   0x1   :  { %8 = vsyncpa [#allocation6], 0 }
   0x2   :  { %9 = vsyncpa [#allocation4], 0  ;;  %s164_s9 = smov [#allocation2]   ;;  %s92_s13 = scalar_lea.hbm %s220_s0, 256 }
   0x3   :  { %s19_s10 = sshll.u32 %s164_s9, 4  ;;  %p93_p0 = scmp.ne.s32.totalorder %s220_s0, %s92_s13  ;;  %s20_s10 = int_to_ptr.vmem [resolvable:$true] %s19_s10 }
   0x4   :  { %p96_p1 = scmp.lt.u32.totalorder %s92_s13, %s220_s0 }
   0x6   :  { %p98_p2 = pnand %p96_p1, %p93_p0 }
   0x8   :  { %101 = shalt.err (!%p98_p2)
}
   0x9   :  { %s102_s18 = scalar_lea.vmem %s20_s10, 256  ;;  %p107_p4 = scmp.lt.s32.totalorder %s20_s10, %s20_s10 }
   0xa   :  { %p103_p3 = scmp.ne.s32.totalorder %s20_s10, %s102_s18  ;;  %p108_p5 = scmp.lt.s32.totalorder %s102_s18, %s102_s18 }
   0xc   :  { %p109_p6 = por %p108_p5, %p107_p4 }
   0xe   :  { %p110_p7 = pnand %p109_p6, %p103_p3 }
  0x10   :  { %113 = shalt.err (!%p110_p7)
}
  0x11   :  { %s165_s19 = smov 128   ;;  %s166_s20 = smov 8  }
  0x12   :  { %25 = dma.hbm_to_vmem [thread:$0]  %s220_s0, 256, %s20_s10, [#allocation3], %s165_s19, %s165_s19, %s166_s20  }
  0x13   :  { %s167_s23 = smov [#allocation5]   ;;  %s114_s27 = scalar_lea.hbm %s221_s1, 256 }
  0x14   :  { %s35_s24 = sshll.u32 %s167_s23, 4  ;;  %p115_p8 = scmp.ne.s32.totalorder %s221_s1, %s114_s27  ;;  %s36_s24 = int_to_ptr.vmem [resolvable:$true] %s35_s24 }
  0x15   :  { %p118_p9 = scmp.lt.u32.totalorder %s114_s27, %s221_s1 }
  0x17   :  { %p120_p10 = pnand %p118_p9, %p115_p8 }
  0x19   :  { %123 = shalt.err (!%p120_p10)
}
  0x1a   :  { %s124_s4 = scalar_lea.vmem %s36_s24, 256  ;;  %p129_p12 = scmp.lt.s32.totalorder %s36_s24, %s36_s24 }
  0x1b   :  { %p125_p11 = scmp.ne.s32.totalorder %s36_s24, %s124_s4  ;;  %p130_p13 = scmp.lt.s32.totalorder %s124_s4, %s124_s4 }
  0x1d   :  { %p131_p0 = por %p130_p13, %p129_p12 }
  0x1f   :  { %p132_p1 = pnand %p131_p0, %p125_p11 }
  0x21   :  { %135 = shalt.err (!%p132_p1)
}
  0x22   :  { %41 = dma.hbm_to_vmem [thread:$0]  %s221_s1, 256, %s36_s24, [#allocation6], %s165_s19, %s165_s19, %s166_s20  }
  0x23   :  { %158 = dma.done.wait [#allocation3], 256  }
  0x24   :  { %159 = vsyncadd [#allocation3], 4294967040 }
  0x25   :  { %160 = dma.done.wait [#allocation6], 256  }
  0x26   :  { %161 = vsyncadd [#allocation6], 4294967040  ;;  %v57_v0 = vld [vmem:[#allocation2] sm:$0xff]  ;;  %v58_v1 = vld [vmem:[#allocation2 + $0x8] sm:$0xff]  ;;  %s168_s6 = smov [#allocation7]  }
  0x27   :  { %v59_v2 = vld [vmem:[#allocation5] sm:$0xff]  ;;  %v60_v3 = vld [vmem:[#allocation5 + $0x8] sm:$0xff]  ;;  %s76_s7 = sshll.u32 %s168_s6, 4  ;;  %s77_s7 = int_to_ptr.vmem [resolvable:$true] %s76_s7 }
  0x28   :  { %v61_v4 = vsub.f32 %v57_v0, %v59_v2  ;;  %v62_v5 = vsub.f32 %v58_v1, %v60_v3  ;;  %s136_s8 = scalar_lea.vmem %s77_s7, 128  ;;  %p141_p3 = scmp.lt.s32.totalorder %s77_s7, %s77_s7 }
  0x29   :  { %p137_p2 = scmp.ne.s32.totalorder %s77_s7, %s136_s8  ;;  %p142_p4 = scmp.lt.s32.totalorder %s136_s8, %s136_s8 }
  0x2a   :  { %v63_v6 = vmul.f32 %v61_v4, %v61_v4  ;;  %v64_v7 = vmul.f32 %v62_v5, %v62_v5 }
  0x2b   :  { %p143_p5 = por %p142_p4, %p141_p3 }
  0x2c   :  { %v65_v8 = vadd.f32 %v64_v7, %v63_v6 }
  0x2d   :  { %p144_p6 = pnand %p143_p5, %p137_p2 }
  0x2e   :  { %69 = vst [vmem:[#allocation7] sm:$0xff] %v65_v8 }
  0x2f   :  { %147 = shalt.err (!%p144_p6)
}
  0x30   :  { %s148_s10 = scalar_lea.hbm %s222_s2, 128 }
  0x31   :  { %p149_p7 = scmp.ne.s32.totalorder %s222_s2, %s148_s10  ;;  %p152_p8 = scmp.lt.u32.totalorder %s148_s10, %s222_s2 }
  0x33   :  { %p154_p9 = pnand %p152_p8, %p149_p7 }
  0x35   :  { %157 = shalt.err (!%p154_p9)
}
  0x36   :  { %79 = dma.vmem_to_hbm [thread:$0]  %s77_s7, 128, %s222_s2, [#allocation4]  }
  0x37   :  { %162 = dma.done.wait [#allocation4], 128  }
  0x38   :  { %163 = vsyncadd [#allocation4], 4294967168 }
  0x39   :  { %83 = vsyncpa [#allocation3], 1 }
  0x3a   :  { %84 = vsyncpa [#allocation6], 1 }
  0x3b   :  { %85 = vsyncpa [#allocation4], 1 }

</bundles_post_ra>
